<compile_context>
chip_gen: v7x
topology: tpu7x:2x2x1
jax: 0.10.0
libtpu: 0.0.40
codegen_flags: <defaults>
</compile_context>

<pallas_src>
import math
import functools

import jax
import jax.numpy as jnp
from jax import lax
from jax.experimental import pallas as pl
from jax.experimental.pallas import tpu as pltpu


# ----------------------------------------------------------------------------
# Fused Pallas kernel: one batch element per grid step
# ----------------------------------------------------------------------------

def _fused_attention_kernel(q_in_ref, k_in_ref, v_in_ref,
                            wq_ref, bq_ref, wk_ref, bk_ref, wv_ref, bv_ref,
                            o_ref):
    bf16 = jnp.bfloat16

    # Linear projections: bf16 matmul inputs, f32 accumulation, f32 bias add.
    q = jnp.dot(q_in_ref[...].astype(bf16), wq_ref[...],
                preferred_element_type=jnp.float32) + bq_ref[...]
    k = jnp.dot(k_in_ref[...].astype(bf16), wk_ref[...],
                preferred_element_type=jnp.float32) + bk_ref[...]
    v = jnp.dot(v_in_ref[...].astype(bf16), wv_ref[...],
                preferred_element_type=jnp.float32) + bv_ref[...]

    # Fold 1/sqrt(dim_k) into Q (S x dk) instead of scaling the S x S score matrix.
    dk = q.shape[-1]
    q = q * jnp.float32(1.0 / math.sqrt(dk))

    # scores = Q @ K^T  (contract over dk without materializing a transpose)
    s = lax.dot_general(q.astype(bf16), k.astype(bf16),
                        (((1,), (1,)), ((), ())),
                        preferred_element_type=jnp.float32)

    # softmax in f32 (max-subtracted); approx reciprocal runs on the EUP slot.
    s = s - jnp.max(s, axis=-1, keepdims=True)
    p = jnp.exp(s)
    p = p * pl.reciprocal(jnp.sum(p, axis=-1, keepdims=True), approx=True)

    # output = P @ V
    o_ref[...] = jnp.dot(p.astype(bf16), v.astype(bf16),
                         preferred_element_type=jnp.float32)


# ----------------------------------------------------------------------------
# pallas_call wrapper
# ----------------------------------------------------------------------------

def pallas_attention(query, key, value, wq, bq, wk, bk, wv, bv):
    # Match the torch module: inputs cast to float32.
    query = query.astype(jnp.float32)
    key = key.astype(jnp.float32)
    value = value.astype(jnp.float32)

    B, Sq, Din = query.shape
    Skv = key.shape[1]
    Dk = wq.shape[1]
    Dv = wv.shape[1]

    # Cast weights to bf16 before the call: halves weight DMA bytes into VMEM.
    wq_b = wq.astype(jnp.bfloat16)
    wk_b = wk.astype(jnp.bfloat16)
    wv_b = wv.astype(jnp.bfloat16)

    return pl.pallas_call(
        _fused_attention_kernel,
        out_shape=jax.ShapeDtypeStruct((B, Sq, Dv), jnp.float32),
        grid=(B,),
        in_specs=[
            pl.BlockSpec((None, Sq, Din), lambda b: (b, 0, 0)),
            pl.BlockSpec((None, Skv, Din), lambda b: (b, 0, 0)),
            pl.BlockSpec((None, Skv, Din), lambda b: (b, 0, 0)),
            pl.BlockSpec((Din, Dk), lambda b: (0, 0)),
            pl.BlockSpec((1, Dk), lambda b: (0, 0)),
            pl.BlockSpec((Din, Dk), lambda b: (0, 0)),
            pl.BlockSpec((1, Dk), lambda b: (0, 0)),
            pl.BlockSpec((Din, Dv), lambda b: (0, 0)),
            pl.BlockSpec((1, Dv), lambda b: (0, 0)),
        ],
        out_specs=pl.BlockSpec((None, Sq, Dv), lambda b: (b, 0, 0)),
        compiler_params=pltpu.CompilerParams(
            dimension_semantics=("parallel",)),
    )(query, key, value, wq_b, bq, wk_b, bk, wv_b, bv)


@jax.jit
def attention_forward(query, key, value, params):
    return pallas_attention(query, key, value,
                            params["wq"], params["bq"],
                            params["wk"], params["bk"],
                            params["wv"], params["bv"])


# ----------------------------------------------------------------------------
# Parameters (torch nn.Linear-style uniform init, stored as (in, out))
# ----------------------------------------------------------------------------

def _init_linear(key, din, dout):
    kw, kb = jax.random.split(key)
    bound = 1.0 / math.sqrt(din)
    w = jax.random.uniform(kw, (din, dout), jnp.float32, -bound, bound)
    b = jax.random.uniform(kb, (1, dout), jnp.float32, -bound, bound)
    return w, b


def init_attention_params(key, dim_in, dim_k, dim_v):
    kq, kk, kv = jax.random.split(key, 3)
    wq, bq = _init_linear(kq, dim_in, dim_k)
    wk, bk = _init_linear(kk, dim_in, dim_k)
    wv, bv = _init_linear(kv, dim_in, dim_v)
    return dict(wq=wq, bq=bq, wk=wk, bk=bk, wv=wv, bv=bv)


# ----------------------------------------------------------------------------
# Pure-JAX f32 reference (correctness check)
# ----------------------------------------------------------------------------

def ref_forward(query, key, value, params):
    hp = jax.lax.Precision.HIGHEST
    dim_k = params["wq"].shape[1]
    q = jnp.einsum("bsd,dk->bsk", query, params["wq"], precision=hp) + params["bq"][0]
    k = jnp.einsum("bsd,dk->bsk", key, params["wk"], precision=hp) + params["bk"][0]
    v = jnp.einsum("bsd,dk->bsk", value, params["wv"], precision=hp) + params["bv"][0]
    s = jnp.einsum("bqd,bkd->bqk", q, k, precision=hp) / math.sqrt(dim_k)
    p = jax.nn.softmax(s, axis=-1)
    return jnp.einsum("bqk,bkd->bqd", p, v, precision=hp)


# ----------------------------------------------------------------------------

if __name__ == "__main__":
    B, S = 2, 8
    dim_in, dim_k, dim_v = 32, 16, 32

    key = jax.random.PRNGKey(0)
    kq, kk, kv, kp = jax.random.split(key, 4)
    query = jax.random.normal(kq, (B, S, dim_in), jnp.float32)
    key_in = jax.random.normal(kk, (B, S, dim_in), jnp.float32)
    value = jax.random.normal(kv, (B, S, dim_in), jnp.float32)
    params = init_attention_params(kp, dim_in, dim_k, dim_v)

    out = attention_forward(query, key_in, value, params)
    out = jax.block_until_ready(out)

    ref = ref_forward(query, key_in, value, params)
    assert out.shape == (B, S, dim_v)
    # Tolerance accounts for bf16 matmul inputs (f32 accumulation); math is identical.
    assert jnp.allclose(out, ref, atol=3e-2, rtol=3e-2), "mismatch vs reference"

    print("KERNEL_OK")
</pallas_src>

<mosaic_0001>
module attributes {stable_mosaic.version = 11 : i64} {
  func.func @_fused_attention_kernel(%arg0: i32, %arg1: memref<1x8x32xf32, #tpu.memory_space<vmem>>, %arg2: memref<1x8x32xf32, #tpu.memory_space<vmem>>, %arg3: memref<1x8x32xf32, #tpu.memory_space<vmem>>, %arg4: memref<32x16xbf16, #tpu.memory_space<vmem>>, %arg5: memref<1x16xf32, #tpu.memory_space<vmem>>, %arg6: memref<32x16xbf16, #tpu.memory_space<vmem>>, %arg7: memref<1x16xf32, #tpu.memory_space<vmem>>, %arg8: memref<32x32xbf16, #tpu.memory_space<vmem>>, %arg9: memref<1x32xf32, #tpu.memory_space<vmem>>, %arg10: memref<1x8x32xf32, #tpu.memory_space<vmem>>) attributes {dimension_semantics = [#tpu.dimension_semantics<parallel>], iteration_bounds = array<i64: 2>, scalar_prefetch = 0 : i64, scratch_operands = 0 : i64, tpu.core_type = #tpu.core_type<tc>, window_params = [{transform_indices = @transform_0, window_bounds = array<i64: 1, 8, 32>}, {transform_indices = @transform_1, window_bounds = array<i64: 1, 8, 32>}, {transform_indices = @transform_2, window_bounds = array<i64: 1, 8, 32>}, {pipeline_mode = #tpu.pipeline_mode<synchronous>, transform_indices = @transform_3, window_bounds = array<i64: 32, 16>}, {pipeline_mode = #tpu.pipeline_mode<synchronous>, transform_indices = @transform_4, window_bounds = array<i64: 1, 16>}, {pipeline_mode = #tpu.pipeline_mode<synchronous>, transform_indices = @transform_5, window_bounds = array<i64: 32, 16>}, {pipeline_mode = #tpu.pipeline_mode<synchronous>, transform_indices = @transform_6, window_bounds = array<i64: 1, 16>}, {pipeline_mode = #tpu.pipeline_mode<synchronous>, transform_indices = @transform_7, window_bounds = array<i64: 32, 32>}, {pipeline_mode = #tpu.pipeline_mode<synchronous>, transform_indices = @transform_8, window_bounds = array<i64: 1, 32>}, {transform_indices = @transform_9, window_bounds = array<i64: 1, 8, 32>}]} {
    %c0 = arith.constant 0 : index
    %c0_0 = arith.constant 0 : index
    %c0_1 = arith.constant 0 : index
    %0 = vector.load %arg1[%c0, %c0_0, %c0_1] : memref<1x8x32xf32, #tpu.memory_space<vmem>>, vector<1x8x32xf32>
    %1 = vector.shape_cast %0 : vector<1x8x32xf32> to vector<8x32xf32>
    %2 = arith.truncf %1 : vector<8x32xf32> to vector<8x32xbf16>
    %c0_2 = arith.constant 0 : index
    %c0_3 = arith.constant 0 : index
    %3 = vector.load %arg4[%c0_2, %c0_3] : memref<32x16xbf16, #tpu.memory_space<vmem>>, vector<32x16xbf16>
    %cst = arith.constant dense<0.000000e+00> : vector<8x16xf32>
    %4 = tpu.matmul %2, %3, %cst {dimension_numbers = #tpu.dot_dimension_numbers<[1], [0], [0], [1], [0, 0, 1, 1], [], []>} : vector<8x32xbf16>, vector<32x16xbf16>, vector<8x16xf32> -> vector<8x16xf32>
    %c0_4 = arith.constant 0 : index
    %c0_5 = arith.constant 0 : index
    %5 = vector.load %arg5[%c0_4, %c0_5] : memref<1x16xf32, #tpu.memory_space<vmem>>, vector<1x16xf32>
    %6 = vector.broadcast %5 : vector<1x16xf32> to vector<8x16xf32>
    %7 = arith.addf %4, %6 : vector<8x16xf32>
    %c0_6 = arith.constant 0 : index
    %c0_7 = arith.constant 0 : index
    %c0_8 = arith.constant 0 : index
    %8 = vector.load %arg2[%c0_6, %c0_7, %c0_8] : memref<1x8x32xf32, #tpu.memory_space<vmem>>, vector<1x8x32xf32>
    %9 = vector.shape_cast %8 : vector<1x8x32xf32> to vector<8x32xf32>
    %10 = arith.truncf %9 : vector<8x32xf32> to vector<8x32xbf16>
    %c0_9 = arith.constant 0 : index
    %c0_10 = arith.constant 0 : index
    %11 = vector.load %arg6[%c0_9, %c0_10] : memref<32x16xbf16, #tpu.memory_space<vmem>>, vector<32x16xbf16>
    %cst_11 = arith.constant dense<0.000000e+00> : vector<8x16xf32>
    %12 = tpu.matmul %10, %11, %cst_11 {dimension_numbers = #tpu.dot_dimension_numbers<[1], [0], [0], [1], [0, 0, 1, 1], [], []>} : vector<8x32xbf16>, vector<32x16xbf16>, vector<8x16xf32> -> vector<8x16xf32>
    %c0_12 = arith.constant 0 : index
    %c0_13 = arith.constant 0 : index
    %13 = vector.load %arg7[%c0_12, %c0_13] : memref<1x16xf32, #tpu.memory_space<vmem>>, vector<1x16xf32>
    %14 = vector.broadcast %13 : vector<1x16xf32> to vector<8x16xf32>
    %15 = arith.addf %12, %14 : vector<8x16xf32>
    %c0_14 = arith.constant 0 : index
    %c0_15 = arith.constant 0 : index
    %c0_16 = arith.constant 0 : index
    %16 = vector.load %arg3[%c0_14, %c0_15, %c0_16] : memref<1x8x32xf32, #tpu.memory_space<vmem>>, vector<1x8x32xf32>
    %17 = vector.shape_cast %16 : vector<1x8x32xf32> to vector<8x32xf32>
    %18 = arith.truncf %17 : vector<8x32xf32> to vector<8x32xbf16>
    %c0_17 = arith.constant 0 : index
    %c0_18 = arith.constant 0 : index
    %19 = vector.load %arg8[%c0_17, %c0_18] : memref<32x32xbf16, #tpu.memory_space<vmem>>, vector<32x32xbf16>
    %cst_19 = arith.constant dense<0.000000e+00> : vector<8x32xf32>
    %20 = tpu.matmul %18, %19, %cst_19 {dimension_numbers = #tpu.dot_dimension_numbers<[1], [0], [0], [1], [0, 0, 1, 1], [], []>} : vector<8x32xbf16>, vector<32x32xbf16>, vector<8x32xf32> -> vector<8x32xf32>
    %c0_20 = arith.constant 0 : index
    %c0_21 = arith.constant 0 : index
    %21 = vector.load %arg9[%c0_20, %c0_21] : memref<1x32xf32, #tpu.memory_space<vmem>>, vector<1x32xf32>
    %22 = vector.broadcast %21 : vector<1x32xf32> to vector<8x32xf32>
    %23 = arith.addf %20, %22 : vector<8x32xf32>
    %cst_22 = arith.constant 2.500000e-01 : f32
    %24 = vector.broadcast %cst_22 : f32 to vector<8x16xf32>
    %25 = arith.mulf %7, %24 : vector<8x16xf32>
    %26 = arith.truncf %25 : vector<8x16xf32> to vector<8x16xbf16>
    %27 = arith.truncf %15 : vector<8x16xf32> to vector<8x16xbf16>
    %cst_23 = arith.constant dense<0.000000e+00> : vector<8x8xf32>
    %28 = tpu.matmul %26, %27, %cst_23 {dimension_numbers = #tpu.dot_dimension_numbers<[1], [1], [0], [0], [0, 0, 1, 0], [], []>} : vector<8x16xbf16>, vector<8x16xbf16>, vector<8x8xf32> -> vector<8x8xf32>
    %cst_24 = arith.constant dense<0xFF800000> : vector<8xf32>
    %29 = vector.multi_reduction <maximumf>, %28, %cst_24 [1] : vector<8x8xf32> to vector<8xf32>
    %30 = vector.shape_cast %29 : vector<8xf32> to vector<8x1xf32>
    %31 = vector.broadcast %30 : vector<8x1xf32> to vector<8x8xf32>
    %32 = arith.subf %28, %31 : vector<8x8xf32>
    %33 = math.exp %32 : vector<8x8xf32>
    %cst_25 = arith.constant dense<0.000000e+00> : vector<8xf32>
    %34 = vector.multi_reduction <add>, %33, %cst_25 [1] : vector<8x8xf32> to vector<8xf32>
    %35 = vector.shape_cast %34 : vector<8xf32> to vector<8x1xf32>
    %36 = tpu.reciprocal %35 {approx = true} : vector<8x1xf32> -> vector<8x1xf32>
    %37 = vector.broadcast %36 : vector<8x1xf32> to vector<8x8xf32>
    %38 = arith.mulf %33, %37 : vector<8x8xf32>
    %39 = arith.truncf %38 : vector<8x8xf32> to vector<8x8xbf16>
    %40 = arith.truncf %23 : vector<8x32xf32> to vector<8x32xbf16>
    %cst_26 = arith.constant dense<0.000000e+00> : vector<8x32xf32>
    %41 = tpu.matmul %39, %40, %cst_26 {dimension_numbers = #tpu.dot_dimension_numbers<[1], [0], [0], [1], [0, 0, 1, 1], [], []>} : vector<8x8xbf16>, vector<8x32xbf16>, vector<8x32xf32> -> vector<8x32xf32>
    %c0_27 = arith.constant 0 : index
    %c0_28 = arith.constant 0 : index
    %c0_29 = arith.constant 0 : index
    %42 = vector.load %arg10[%c0_27, %c0_28, %c0_29] : memref<1x8x32xf32, #tpu.memory_space<vmem>>, vector<1x8x32xf32>
    %43 = vector.shape_cast %42 : vector<1x8x32xf32> to vector<8x32xf32>
    %44 = vector.shape_cast %41 : vector<8x32xf32> to vector<1x8x32xf32>
    tpu.vector_store %arg10[%c0_27, %c0_28, %c0_29], %44 {strides = array<i32>} : memref<1x8x32xf32, #tpu.memory_space<vmem>>, vector<1x8x32xf32>,
    return
  }
  func.func @transform_0(%arg0: i32) -> (i32, i32, i32) {
    %c0_i32 = arith.constant 0 : i32
    %c0_i32_0 = arith.constant 0 : i32
    %c0_i32_1 = arith.constant 0 : i32
    return %arg0, %c0_i32, %c0_i32_0 : i32, i32, i32
  }
  func.func @transform_1(%arg0: i32) -> (i32, i32, i32) {
    %c0_i32 = arith.constant 0 : i32
    %c0_i32_0 = arith.constant 0 : i32
    %c0_i32_1 = arith.constant 0 : i32
    return %arg0, %c0_i32, %c0_i32_0 : i32, i32, i32
  }
  func.func @transform_2(%arg0: i32) -> (i32, i32, i32) {
    %c0_i32 = arith.constant 0 : i32
    %c0_i32_0 = arith.constant 0 : i32
    %c0_i32_1 = arith.constant 0 : i32
    return %arg0, %c0_i32, %c0_i32_0 : i32, i32, i32
  }
  func.func @transform_3(%arg0: i32) -> (i32, i32) {
    %c0_i32 = arith.constant 0 : i32
    %c0_i32_0 = arith.constant 0 : i32
    %c0_i32_1 = arith.constant 0 : i32
    return %c0_i32, %c0_i32_0 : i32, i32
  }
  func.func @transform_4(%arg0: i32) -> (i32, i32) {
    %c0_i32 = arith.constant 0 : i32
    %c0_i32_0 = arith.constant 0 : i32
    %c0_i32_1 = arith.constant 0 : i32
    return %c0_i32, %c0_i32_0 : i32, i32
  }
  func.func @transform_5(%arg0: i32) -> (i32, i32) {
    %c0_i32 = arith.constant 0 : i32
    %c0_i32_0 = arith.constant 0 : i32
    %c0_i32_1 = arith.constant 0 : i32
    return %c0_i32, %c0_i32_0 : i32, i32
  }
  func.func @transform_6(%arg0: i32) -> (i32, i32) {
    %c0_i32 = arith.constant 0 : i32
    %c0_i32_0 = arith.constant 0 : i32
    %c0_i32_1 = arith.constant 0 : i32
    return %c0_i32, %c0_i32_0 : i32, i32
  }
  func.func @transform_7(%arg0: i32) -> (i32, i32) {
    %c0_i32 = arith.constant 0 : i32
    %c0_i32_0 = arith.constant 0 : i32
    %c0_i32_1 = arith.constant 0 : i32
    return %c0_i32, %c0_i32_0 : i32, i32
  }
  func.func @transform_8(%arg0: i32) -> (i32, i32) {
    %c0_i32 = arith.constant 0 : i32
    %c0_i32_0 = arith.constant 0 : i32
    %c0_i32_1 = arith.constant 0 : i32
    return %c0_i32, %c0_i32_0 : i32, i32
  }
  func.func @transform_9(%arg0: i32) -> (i32, i32, i32) {
    %c0_i32 = arith.constant 0 : i32
    %c0_i32_0 = arith.constant 0 : i32
    %c0_i32_1 = arith.constant 0 : i32
    return %arg0, %c0_i32, %c0_i32_0 : i32, i32, i32
  }
}

</mosaic_0001>

<bundles_post_ra>
// kernel: attention_forward.1
= control target key start
LH: loop header
LB: loop body
LE: loop exit
PB: predicated region body
PF: predicated region fallthrough
CT: control target
= control target key end

     0   :  { %14 = vsyncpa [#allocation3], 0  ;;  %s1170_s0 = inlined_call_operand.vmem [shape: f32[2,8,32], index: 0, kind: input, shape index: {}]   ;;  %s1171_s1 = inlined_call_operand.vmem [shape: f32[2,8,32], index: 1, kind: input, shape index: {}]   ;;  %s1172_s2 = inlined_call_operand.vmem [shape: f32[2,8,32], index: 2, kind: input, shape index: {}]   ;;  %s1173_s3 = inlined_call_operand.vmem [shape: bf16[32,16], index: 3, kind: input, shape index: {}]   ;;  %s1174_s4 = inlined_call_operand.vmem [shape: f32[1,16], index: 4, kind: input, shape index: {}]   ;;  %s1175_s5 = inlined_call_operand.vmem [shape: bf16[32,16], index: 5, kind: input, shape index: {}]   ;;  %s1176_s6 = inlined_call_operand.vmem [shape: f32[1,16], index: 6, kind: input, shape index: {}]   ;;  %s1177_s7 = inlined_call_operand.vmem [shape: bf16[32,32], index: 7, kind: input, shape index: {}]   ;;  %s1178_s8 = inlined_call_operand.vmem [shape: f32[1,32], index: 8, kind: input, shape index: {}]   ;;  %s1179_s9 = inlined_call_operand.hbm [shape: f32[2,8,32], index: 9, kind: output, shape index: {}]  }
   0x1   :  { %16 = vsyncpa [#allocation3 + $0x1], 0  ;;  %s1020_s30 = smov 0   ;;  %s1022_s10 = smov 0  }
   0x2   :  { %s1024_s11 = smov 0   ;;  %s1026_s12 = smov 0  }
   0x3 LB: > { %s1041_s13 = sadd.s32 4294967295, %s965_s12   ;;  %s777_s14 = sadd.s32 4294967294, %s965_s12   ;;  %s965_s12 = sphi %s1026_s12, %s1185_s12   ;;  %s961_s11 = sphi %s1024_s11, %s1184_s11   ;;  %s957_s10 = sphi %s1022_s10, %s1183_s10   ;;  %s953_s30 = sphi %s1020_s30, %s1182_s30  }
   0x4   : > { %s1045_s15 = sadd.s32 1, %s965_s12   ;;  %s233_s16 = sadd.s32 1, %s961_s11 }
   0x5   : > { %s230_s17 = ssub.s32 %s965_s12, %s1045_s15  ;;  %p243_p0 = scmp.ne.s32.totalorder %s961_s11, %s957_s10 }
   0x6   : > { %p231_p1 = scmp.eq.s32.totalorder %s230_s17, 0  ;;  %p244_p2 = scmp.eq.s32.totalorder %s1041_s13, 1 }
   0x7   : > { %p249_p3 = scmp.ne.s32.totalorder %s957_s10, %s953_s30  ;;  %p250_p4 = scmp.eq.s32.totalorder %s777_s14, 1 }
   0x8   : > { %s1056_s18 = scalar_select %p231_p1, %s961_s11, %s233_s16  }
   0x9   : > { %p1058_p5 = por %p244_p2, %p243_p0  ;;  %p1062_p6 = por %p250_p4, %p249_p3 }
   0xa   : > { %p780_p7 = scmp.ge.s32.totalorder %s965_s12, 1  ;;  %p307_p8 = scmp.lt.s32.totalorder %s965_s12, 3 }
   0xc   : > { %p308_p9 = pnand %p780_p7, %p307_p8 }
   0xd   : > { %v893_v0 = vld [vmem:[%s1175_s5] sm:$0xff] (!%p308_p9)   ;;  %v967_v1 = vmov (!%p308_p9), 0.0   ;;  %v895_v3 = vld [vmem:[%s1175_s5 + $0x8] sm:$0xff] (!%p308_p9)   ;;  %vm968_vm0 = vmmov (!%p308_p9), 0   ;;  %p350_p10 = scmp.lt.s32.totalorder (!%p308_p9), %s1041_s13, 1  ;;  %vm388_vm1 = vcmask (!%p308_p9), 261120  }
   0xe   : > { %311 = sbr.rel (%p308_p9) target bundleno = 1007 (0x3ef), region = 56  ;;  %824 = vmatprep.subr.bf16.mxu1 (!%p308_p9), %v967_v1  ;;  %816 = vmatprep.subr.bf16.mxu0 (!%p308_p9), %v967_v1  ;;  %v894_v2 = vld [vmem:[%s1173_s3] sm:$0xff] (!%p308_p9)   ;;  %v896_v4 = vld [vmem:[%s1173_s3 + $0x8] sm:$0xff] (!%p308_p9)   ;;  %vm571_vm2 = vcmask (!%p308_p9), 130048   ;;  %vm618_vm3 = vcmask (!%p308_p9), 64512   ;;  %vm635_vm4 = vcmask (!%p308_p9), 1043456  }
   0xf   : > { %825 = vmatpush3.bf16.msra.mxu1 (!%p308_p9), %v893_v0  ;;  %828 = vmatprep.mubr.msk.bf16.mxu1 (!%p308_p9), %vm968_vm0, %v967_v1  ;;  %v789_v9 = vld [vmem:[%s1176_s6] ss:$0 sm:$0xff] (!%p308_p9)  ;;  %v898_v26 = vld [vmem:[%s1177_s7 + $0x8] sm:$0xff] (!%p308_p9)   ;;  %s347_s26 = sand.u32 (!%p308_p9), 1, %s957_s10   ;;  %s800_s28 = sshll.u32 (!%p308_p9), %s1041_s13, 7 }
  0x10   : > { %826 = vmatprep.subr.bf16.mxu1 (!%p308_p9), %v967_v1  ;;  %817 = vmatpush3.bf16.msra.mxu0 (!%p308_p9), %v894_v2  ;;  %v785_v10 = vld [vmem:[%s1174_s4] ss:$0 sm:$0xff] (!%p308_p9)  ;;  %s781_s27 = sshll.u32 (!%p308_p9), %s347_s26, 3  ;;  %s681_s23 = scalar_lea.sflag (!%p308_p9), [#allocation3], %s347_s26 }
  0x11   : > { %818 = vmatprep.subr.bf16.mxu0 (!%p308_p9), %v967_v1  ;;  %820 = vmatprep.mubr.msk.bf16.mxu0 (!%p308_p9), %vm968_vm0, %v967_v1  ;;  %v897_v25 = vld [vmem:[%s1177_s7] sm:$0xff] (!%p308_p9)  }
  0x12   : > { %v793_v42 = vld [vmem:[%s1178_s8] ss:$0 sm:$0xff] (!%p308_p9) }
  0x13   : > { %827 = vmatpush3.bf16.msra.mxu1 (!%p308_p9), %v895_v3 }
  0x14   : > { %819 = vmatpush3.bf16.msra.mxu0 (!%p308_p9), %v896_v4  ;;  %840 = vmatprep.subr.bf16.mxu1 (!%p308_p9), %v967_v1 }
  0x15   : > { %s351_s29 = scalar_select %p350_p10, %s1041_s13, 1  ;;  %832 = vmatprep.subr.bf16.mxu0 %v967_v1 }
  0x16   : > { %s969_s13 = smov [#allocation2]  }
  0x17   : > { %s1084_s14 = sshll.u32 %s351_s29, 3  ;;  %s349_s29 = scalar_lea.vmem [#allocation2], %s781_s27 }
  0x18   : > { %s357_s21 = scalar_lea.vmem %s1171_s1, %s1084_s14  ;;  %s353_s24 = scalar_lea.vmem %s1170_s0, %s1084_s14 }
  0x19   : > { %v432_v5 = vld [vmem:[%s357_s21] sm:$0xff]  ;;  %s361_s22 = scalar_lea.vmem %s1172_s2, %s1084_s14  ;;  %s694_s16 = sshll.u32 %s349_s29, 4  ;;  %s1129_s16 = int_to_ptr.vmem [resolvable:$true] %s694_s16 }
  0x1a   : > { %v363_v6 = vld [vmem:[%s353_s24] sm:$0xff]  ;;  %v433_v7 = vpack.c.bf16 %v432_v5, %v432_v5  ;;  %s903_s24 = scalar_lea.vmem %s1129_s16, 128  ;;  %s907_s14 = sshll.u32 %s969_s13, 4  ;;  %s908_s14 = int_to_ptr.vmem [resolvable:$false] %s907_s14 }
  0x1b   : > { %v364_v8 = vpack.c.bf16 %v363_v6, %v363_v6  ;;  %v500_v27 = vld [vmem:[%s361_s22] sm:$0xff]  ;;  %s1127_s22 = scalar_lea.hbm %s1179_s9, %s800_s28  ;;  %p904_p11 = scmp.ne.s32.totalorder %s1129_s16, %s903_s24 }
  0x1c   : > { %829 = vmatmul.mubr.msk.bf16.vlgmr.msra.gmra.mrb[0].mxu1 %vm388_vm1, %v433_v7  ;;  %v501_v28 = vpack.c.bf16 %v500_v27, %v500_v27  ;;  %s909_s25 = scalar_lea.vmem %s908_s14, 256  ;;  %p910_p0 = scmp.lt.s32.totalorder %s1129_s16, %s908_s14 }
  0x1d   : > { %821 = vmatmul.mubr.msk.bf16.vlgmr.msra.gmra.mrb[0].mxu0 %vm388_vm1, %v364_v8  ;;  %842 = vmatprep.mubr.msk.bf16.mxu1 %vm968_vm0, %v967_v1  ;;  %p905_p12 = pnand %p904_p11, %p1058_p5  ;;  %p911_p1 = scmp.lt.s32.totalorder %s909_s25, %s903_s24 }
  0x1e   : > { %836 = vmatprep.mubr.msk.bf16.mxu0 %vm968_vm0, %v967_v1  ;;  %833 = vmatpush3.bf16.msra.mxu0 %v897_v25 }
  0x1f   : > { %834 = vmatprep.subr.bf16.mxu0 %v967_v1  ;;  %p906_p13 = pneg %p905_p12  ;;  %p912_p2 = por %p911_p1, %p910_p0 }
  0x21   : > { %p913_p3 = pnand %p912_p2, %p906_p13 }
  0x22   : > { %835 = vmatpush3.bf16.msra.mxu0 %v898_v26 }
  0x23   : > { %846 = vmatprep.subr.bf16.mxu0 %v967_v1 }
  0x25   : > { %837 = vmatmul.mubr.msk.bf16.vlgmr.msra.gmra.mrb[4].mxu0 %vm388_vm1, %v501_v28 }
  0x26   : > { %848 = vmatprep.mubr.msk.bf16.mxu0 %vm968_vm0, %v967_v1 }
  0xef   : > { %v494_v11 = vpop.f32.mrb[0].mxu1 }
  0xf0   : > { %v426_v12 = vpop.f32.mrb[0].mxu0  ;;  %v495_v13 = vadd.f32 %v789_v9, %v494_v11  ;;  %v830_v14 = vpop.f32.mrb[1].mxu1 }
  0xf1   : > { %v427_v15 = vadd.f32 %v785_v10, %v426_v12  ;;  %v822_v16 = vpop.f32.mrb[1].mxu0  ;;  %v497_v17 = vpop.f32.mrb[2].mxu1 }
  0xf2   : > { %v429_v18 = vpop.f32.mrb[2].mxu0  ;;  %v570_v19 = vpack.c.bf16 %v495_v13, %v495_v13  ;;  %v831_v20 = vpop.f32.mrb[3].mxu1 }
  0xf3   : > { %v823_v21 = vpop.f32.mrb[3].mxu0  ;;  %v568_v23 = vmul.f32 0.25, %v427_v15 }
  0xf4   : > { %v576_v22 = vsel %vm571_vm2, %v570_v19, 0 }
  0xf5   : > { %841 = vmatpush3.bf16.xpose.msra.mxu1 %v576_v22  ;;  %v569_v24 = vpack.c.bf16 %v568_v23, %v568_v23 }
  0xf8   : > { %v562_v39 = vpop.f32.mrb[4].mxu0 }
  0xf9   : > { %v838_v40 = vpop.f32.mrb[5].mxu0  ;;  %v563_v44 = vadd.f32 %v793_v42, %v562_v39 }
  0xfa   : > { %v565_v41 = vpop.f32.mrb[6].mxu0 }
  0xfb   : > { %v839_v43 = vpop.f32.mrb[7].mxu0  ;;  %v631_v45 = vpack.c.bf16 %v563_v44, %v563_v44 }
  0xfc   : > { %843 = vmatmul.mubr.msk.bf16.vlgmr.msra.gmra.mrb[4].mxu1 %vm571_vm2, %v569_v24 }
  0xfd   : > { %v637_v46 = vsel %vm635_vm4, %v631_v45, 0 }
  0xfe   : > { %847 = vmatpush3.bf16.msra.mxu0 %v637_v46 }
 0x1cf   : > { %v612_v29 = vpop.f32.mrb[4].mxu1 }
 0x1d0   : > { %v844_v30 = vpop.f32.mrb[5].mxu1  ;;  %v619_v31 = vsel %vm618_vm3, %v612_v29, -inf }
 0x1d1   : > { %620 = vmax.xlane.f32.xlu0 %v619_v31  ;;  %v615_v32 = vpop.f32.mrb[6].mxu1 }
 0x1d2   : > { %v845_v33 = vpop.f32.mrb[7].mxu1 }
 0x25e   : > { %v621_v34 = vpop.xlane.xlu0 %620 }
 0x25f   : > { %v622_v35 = vsub.f32 %v612_v29, %v621_v34 }
 0x261   : > { %v623_v36 = vmul.f32 1.442695, %v622_v35 }
 0x263   : > { %899 = vpow2.f32 %v623_v36 }
 0x26d   : > { %v900_v37 = vpop.eup %899 }
 0x26e   : > { %v625_v38 = vsel %vm618_vm3, %v900_v37, 0.0 }
 0x26f   : > { %626 = vadd.xlane.f32.xlu0 %v625_v38 }
 0x2fc   : > { %v627_v47 = vpop.xlane.xlu0 %626 }
 0x2fd   : > { %901 = vrcp.f32 %v627_v47 }
 0x307   : > { %v902_v48 = vpop.eup %901 }
 0x308   : > { %v629_v49 = vmul.f32 %v902_v48, %v900_v37 }
 0x30a   : > { %v630_v50 = vpack.c.bf16 %v629_v49, %v629_v49 }
 0x30c   : > { %849 = vmatmul.mubr.msk.bf16.vlgmr.msra.gmra.mrb[8].mxu0 %vm618_vm3, %v630_v50 }
 0x3df   : > { %v673_v51 = vpop.f32.mrb[8].mxu0 }
 0x3e0   : > { %679 = vst.msk [vmem:[%s349_s29] sm:$0xff] %vm388_vm1, %v673_v51  ;;  %v850_v52 = vpop.f32.mrb[9].mxu0 }
 0x3e1   : > { %v676_v53 = vpop.f32.mrb[10].mxu0 }
 0x3e2   : > { %916 = shalt.err (!%p913_p3)
}
 0x3e3   : > { %s917_s26 = scalar_lea.hbm %s1127_s22, 128  ;;  %s921_s29 = scalar_lea.hbm %s1179_s9, 256 }
 0x3e4   : > { %p918_p4 = scmp.ne.s32.totalorder %s1127_s22, %s917_s26  ;;  %p922_p9 = scmp.lt.u32.totalorder %s1127_s22, %s1179_s9 }
 0x3e5   : > { %p923_p10 = scmp.lt.u32.totalorder %s921_s29, %s917_s26  ;;  %p925_p12 = scmp.lt.u32.totalorder %s917_s26, %s1127_s22 }
 0x3e6   : > { %p919_p7 = pnand %p918_p4, %p1058_p5 }
 0x3e7   : > { %p924_p11 = por %p923_p10, %p922_p9 }
 0x3e8   : > { %p920_p8 = pneg %p919_p7 }
 0x3e9   : > { %p926_p13 = por %p925_p12, %p924_p11 }
 0x3eb   : > { %p927_p0 = pnand %p926_p13, %p920_p8 }
 0x3ed   : > { %930 = shalt.err (!%p927_p0)
}
 0x3ee   : > { %852 = dma.vmem_to_hbm [thread:$0]  (%p1058_p5), %s1129_s16, 128, %s1127_s22, %s681_s23   ;;  %v851_v54 = vpop.f32.mrb[11].mxu0 }
 0x3ef PF: > { %p858_p1 = scmp.ge.s32.totalorder %s965_s12, 2  ;;  %s706_s24 = sand.u32 1, %s953_s30  }
 0x3f0   : > { %s707_s13 = scalar_lea.sflag [#allocation3], %s706_s24 }
 0x3f1   : > { %p855_p2 = pnand %p858_p1, %p1062_p6 }
 0x3f3   : > { %948 = dma.done.wait (!%p855_p2), %s707_s13, 128  }
 0x3f4   : > { %950 = vsyncadd (!%p855_p2), %s707_s13, 4294967168  ;;  %p19_p3 = scmp.ge.s32.totalorder %s1045_s15, 4   ;;  %s1182_s30 = smov %s957_s10 }
 0x3f5   : > { %s1183_s10 = smov %s961_s11  ;;  %s1184_s11 = smov %s1056_s18 }
 0x3f6   : > { %s1185_s12 = smov %s1045_s15  ;;  %21 = sbr.rel (!%p19_p3) target bundleno = 3 (0x3), region = 97 }
 0x3fd   :  { %712 = vsyncpa [#allocation3], 1 }
 0x3fe   :  { %714 = vsyncpa [#allocation3 + $0x1], 1 }

</bundles_post_ra>
